<compile_context>
chip_gen: v7x
topology: tpu7x:2x2x1
jax: 0.10.0
libtpu: 0.0.40
codegen_flags: <defaults>
</compile_context>

<pallas_src>
import collections
import functools

import jax
import jax.numpy as jnp
from jax.experimental import pallas as pl
from jax.experimental.pallas import tpu as pltpu

Tableau = collections.namedtuple("Tableau", ["a", "b", "c"])

# Classic RK4 Butcher tableau (deterministic, built in-script).
RK4 = Tableau(
    a=((), (0.5,), (0.0, 0.5), (0.0, 0.0, 1.0)),
    b=(1.0 / 6.0, 1.0 / 3.0, 1.0 / 3.0, 1.0 / 6.0),
    c=(0.0, 0.5, 0.5, 1.0),
)


def _default_elementwise_dtype():
    """bf16 elementwise/tanh only where the VPU/EUP support it (v6e, v7x)."""
    try:
        kind = jax.devices()[0].device_kind.lower()
    except Exception:  # pragma: no cover - no device / CPU fallback
        return jnp.float32
    if ("v6" in kind) or ("v7" in kind) or ("7x" in kind):
        return jnp.bfloat16
    return jnp.float32  # v5e/v5p/v4: no bf16 VPU/EUP, packing would only add work


def _choose_tb(B, requested=None, *, max_tb=128, min_steps=8):
    """Batch tile: <=128 rows (bounds vreg working set of the serial stage chain),
    and enough grid steps that each v7x core gets >=4 pipelined iterations."""
    if requested is not None:
        tb = min(requested, B)
    else:
        tb = min(max_tb, B)
        while tb > 8 and (B // tb) < min_steps:
            tb //= 2
    while tb > 1 and B % tb != 0:
        tb //= 2
    return max(tb, 1)


def _butcher_kernel(tab, matmul_dtype, ew_dtype, s_ref, eps_ref, z_ref, w_ref, o_ref):
    """One batch tile: run all explicit RK stages with f(t, x) = tanh(x @ W + t)."""
    s = s_ref[0]
    eps = eps_ref[0]
    z_f32 = z_ref[...]                      # (tb, D) f32
    z_ew = z_f32.astype(ew_dtype)           # elementwise / MXU-LHS working copy
    w = w_ref[...]                          # (D, D), already in matmul_dtype

    # Static tableau bookkeeping (Python-time): skip zero coefficients and only keep
    # stages that a *later* a-row actually reads.  For RK4 exactly one stage is live.
    a = tuple(tuple(float(v) for v in row) for row in tab.a)
    b = tuple(float(v) for v in tab.b)
    c = tuple(float(v) for v in tab.c)
    n = len(a)

    last_use = {}
    for i in range(n):
        for j, aij in enumerate(a[i]):
            if aij != 0.0:
                last_use[j] = i

    live = {}    # stage index -> stage array (only stages still needed)
    out = None   # b-weighted accumulator, kept in f32 for accuracy
    for i in range(n):
        # x = z + sum_j (eps * a[i][j]) * stage_j   (eps folded on the scalar unit,
        # zero coefficients skipped -> one VPU pass per nonzero term)
        x = z_ew
        for j, aij in enumerate(a[i]):
            if aij != 0.0:
                coeff = (eps * jnp.float32(aij)).astype(ew_dtype)
                x = x + coeff * live[j]

        # f(t, x): MXU in matmul_dtype with f32 accumulation; tanh in ew_dtype
        # (bf16 on v6e/v7x -> 2x EUP throughput, f32 on v5e).
        acc = jnp.dot(x.astype(matmul_dtype), w, preferred_element_type=jnp.float32)
        t = s if c[i] == 0.0 else s + jnp.float32(c[i])
        stage = jnp.tanh((acc + t).astype(ew_dtype))

        # Fuse the b-weighted output accumulation into the stage loop (f32 accumulator).
        if b[i] != 0.0:
            term = jnp.float32(b[i]) * stage.astype(jnp.float32)
            out = term if out is None else out + term

        # Keep the stage only if a later a-row needs it; drop dead stages.
        if last_use.get(i, -1) > i:
            live[i] = stage
        for j in [j for j in live if last_use.get(j) == i]:
            del live[j]

    if out is None:
        out = jnp.zeros_like(z_f32)
    o_ref[...] = out.astype(o_ref.dtype)


def generic_explicit_butcher(tab, s, z, w, eps, *, tb=None,
                             matmul_dtype=jnp.bfloat16,
                             elementwise_dtype=None):
    """Pallas wrapper. z: (B, D) f32, w: (D, D) f32, s/eps: python/np scalars."""
    B, D = z.shape
    if elementwise_dtype is None:
        elementwise_dtype = _default_elementwise_dtype()
    tb = _choose_tb(B, tb)
    assert B % tb == 0, "batch must be divisible by the batch tile"
    assert tb % 8 == 0 or tb == B, "batch tile must be sublane-aligned (multiple of 8)"

    s_arr = jnp.asarray([s], dtype=jnp.float32)
    eps_arr = jnp.asarray([eps], dtype=jnp.float32)
    w_mat = jnp.asarray(w).astype(matmul_dtype)   # cast once: halves W DMA/VMEM for bf16

    kernel = functools.partial(_butcher_kernel, tab, matmul_dtype, elementwise_dtype)

    n_stages = len(tab.a)
    cost = pl.CostEstimate(
        flops=2 * n_stages * B * D * D,                 # one (tb,D)x(D,D) matmul / stage
        transcendentals=n_stages * B * D,               # tanh per stage element
        bytes_accessed=(B * D * 4)                      # z read
                       + (B * D * 4)                    # out write
                       + D * D * w_mat.dtype.itemsize,  # W fetched once (constant index)
    )

    grid_spec = pltpu.PrefetchScalarGridSpec(
        num_scalar_prefetch=0,
        grid=(B // tb,),
        in_specs=[
            pl.BlockSpec(memory_space=pltpu.MemorySpace.SMEM),  # s   (scalar)
            pl.BlockSpec(memory_space=pltpu.MemorySpace.SMEM),  # eps (scalar)
            pl.BlockSpec((tb, D), lambda i: (i, 0)),            # z batch tile
            # W broadcast to every batch tile: grid-invariant block index, so a single
            # buffer suffices (no double-buffer VMEM waste).
            pl.BlockSpec((D, D), lambda i: (0, 0), pipeline_mode=pl.Buffered(1)),
        ],
        out_specs=pl.BlockSpec((tb, D), lambda i: (i, 0)),
    )

    return pl.pallas_call(
        kernel,
        out_shape=jax.ShapeDtypeStruct((B, D), z.dtype),
        grid_spec=grid_spec,
        cost_estimate=cost,
        compiler_params=pltpu.CompilerParams(
            dimension_semantics=("parallel",)),
    )(s_arr, eps_arr, z, w_mat)


def generic_explicit_butcher_ref(tab, s, z, w, eps):
    """Pure-JAX reference mirroring the PyTorch forward exactly."""
    def f(t, x):
        return jnp.tanh(jnp.dot(x, w) + t)

    stages = []
    for i, a_row in enumerate(tab.a):
        stval = jnp.zeros_like(z)
        for j in range(len(stages)):
            stval = stval + a_row[j] * stages[j]
        stages.append(f(s + tab.c[i], z + eps * stval))
    return sum(tab.b[i] * stages[i] for i in range(len(tab.b)))


if __name__ == "__main__":
    key = jax.random.PRNGKey(0)
    kz, kw = jax.random.split(key)

    # Small demo shapes; tb is auto-chosen (here 32 -> 8 grid steps, even step count).
    B, D = 256, 128
    z = jax.random.normal(kz, (B, D), dtype=jnp.float32)
    # Deterministic "parameter" for the vector field f.
    w = 0.1 * jax.random.normal(kw, (D, D), dtype=jnp.float32)
    s = 0.25
    eps = 0.1

    ref = generic_explicit_butcher_ref(RK4, s, z, w, eps)

    # f32 path: tight check that the stage wiring matches the module semantics.
    out_f32 = jax.block_until_ready(
        generic_explicit_butcher(RK4, s, z, w, eps,
                                 matmul_dtype=jnp.float32,
                                 elementwise_dtype=jnp.float32))
    assert out_f32.shape == (B, D) and out_f32.dtype == jnp.float32
    assert jnp.allclose(out_f32, ref, atol=1e-5, rtol=1e-5), "f32 mismatch vs reference"

    # Default fast path: bf16 MXU inputs, bf16 tanh on v6e/v7x (f32 on v5e),
    # f32 b-weighted accumulation (looser tolerance for the reduced precision).
    out = jax.block_until_ready(generic_explicit_butcher(RK4, s, z, w, eps))
    assert out.shape == (B, D) and out.dtype == jnp.float32
    assert jnp.allclose(out, ref, atol=5e-2, rtol=5e-2), "bf16 mismatch vs reference"

    print("KERNEL_OK")
</pallas_src>

<mosaic_0001>
module attributes {stable_mosaic.version = 11 : i64} {
  func.func @_butcher_kernel(%arg0: i32, %arg1: memref<1xf32, #tpu.memory_space<smem>>, %arg2: memref<1xf32, #tpu.memory_space<smem>>, %arg3: memref<32x128xf32, #tpu.memory_space<vmem>>, %arg4: memref<128x128xf32, #tpu.memory_space<vmem>>, %arg5: memref<32x128xf32, #tpu.memory_space<vmem>>) attributes {dimension_semantics = [#tpu.dimension_semantics<parallel>], iteration_bounds = array<i64: 8>, scalar_prefetch = 0 : i64, scratch_operands = 0 : i64, tpu.core_type = #tpu.core_type<tc>, window_params = [{transform_indices = @transform_0, window_bounds = array<i64: 1>}, {transform_indices = @transform_1, window_bounds = array<i64: 1>}, {transform_indices = @transform_2, window_bounds = array<i64: 32, 128>}, {pipeline_mode = #tpu.pipeline_mode<synchronous>, transform_indices = @transform_3, window_bounds = array<i64: 128, 128>}, {transform_indices = @transform_4, window_bounds = array<i64: 32, 128>}]} {
    %c0 = arith.constant 0 : index
    %0 = memref.load %arg1[%c0] : memref<1xf32, #tpu.memory_space<smem>>
    %c0_0 = arith.constant 0 : index
    %1 = memref.load %arg2[%c0_0] : memref<1xf32, #tpu.memory_space<smem>>
    %c0_1 = arith.constant 0 : index
    %c0_2 = arith.constant 0 : index
    %2 = vector.load %arg3[%c0_1, %c0_2] : memref<32x128xf32, #tpu.memory_space<vmem>>, vector<32x128xf32>
    %c0_3 = arith.constant 0 : index
    %c0_4 = arith.constant 0 : index
    %3 = vector.load %arg4[%c0_3, %c0_4] : memref<128x128xf32, #tpu.memory_space<vmem>>, vector<128x128xf32>
    %cst = arith.constant dense<0.000000e+00> : vector<32x128xf32>
    %4 = tpu.matmul %2, %3, %cst {dimension_numbers = #tpu.dot_dimension_numbers<[1], [0], [0], [1], [0, 0, 1, 1], [], []>} : vector<32x128xf32>, vector<128x128xf32>, vector<32x128xf32> -> vector<32x128xf32>
    %5 = vector.broadcast %0 : f32 to vector<32x128xf32>
    %6 = arith.addf %4, %5 : vector<32x128xf32>
    %7 = math.tanh %6 : vector<32x128xf32>
    %cst_5 = arith.constant 0.166666672 : f32
    %8 = vector.broadcast %cst_5 : f32 to vector<32x128xf32>
    %9 = arith.mulf %8, %7 : vector<32x128xf32>
    %cst_6 = arith.constant 5.000000e-01 : f32
    %10 = arith.mulf %1, %cst_6 : f32
    %11 = vector.broadcast %10 : f32 to vector<32x128xf32>
    %12 = arith.mulf %11, %7 : vector<32x128xf32>
    %13 = arith.addf %2, %12 : vector<32x128xf32>
    %cst_7 = arith.constant dense<0.000000e+00> : vector<32x128xf32>
    %14 = tpu.matmul %13, %3, %cst_7 {dimension_numbers = #tpu.dot_dimension_numbers<[1], [0], [0], [1], [0, 0, 1, 1], [], []>} : vector<32x128xf32>, vector<128x128xf32>, vector<32x128xf32> -> vector<32x128xf32>
    %cst_8 = arith.constant 5.000000e-01 : f32
    %15 = arith.addf %0, %cst_8 : f32
    %16 = vector.broadcast %15 : f32 to vector<32x128xf32>
    %17 = arith.addf %14, %16 : vector<32x128xf32>
    %18 = math.tanh %17 : vector<32x128xf32>
    %cst_9 = arith.constant 0.333333343 : f32
    %19 = vector.broadcast %cst_9 : f32 to vector<32x128xf32>
    %20 = arith.mulf %19, %18 : vector<32x128xf32>
    %21 = arith.addf %9, %20 : vector<32x128xf32>
    %cst_10 = arith.constant 5.000000e-01 : f32
    %22 = arith.mulf %1, %cst_10 : f32
    %23 = vector.broadcast %22 : f32 to vector<32x128xf32>
    %24 = arith.mulf %23, %18 : vector<32x128xf32>
    %25 = arith.addf %2, %24 : vector<32x128xf32>
    %cst_11 = arith.constant dense<0.000000e+00> : vector<32x128xf32>
    %26 = tpu.matmul %25, %3, %cst_11 {dimension_numbers = #tpu.dot_dimension_numbers<[1], [0], [0], [1], [0, 0, 1, 1], [], []>} : vector<32x128xf32>, vector<128x128xf32>, vector<32x128xf32> -> vector<32x128xf32>
    %cst_12 = arith.constant 5.000000e-01 : f32
    %27 = arith.addf %0, %cst_12 : f32
    %28 = vector.broadcast %27 : f32 to vector<32x128xf32>
    %29 = arith.addf %26, %28 : vector<32x128xf32>
    %30 = math.tanh %29 : vector<32x128xf32>
    %cst_13 = arith.constant 0.333333343 : f32
    %31 = vector.broadcast %cst_13 : f32 to vector<32x128xf32>
    %32 = arith.mulf %31, %30 : vector<32x128xf32>
    %33 = arith.addf %21, %32 : vector<32x128xf32>
    %cst_14 = arith.constant 1.000000e+00 : f32
    %34 = arith.mulf %1, %cst_14 : f32
    %35 = vector.broadcast %34 : f32 to vector<32x128xf32>
    %36 = arith.mulf %35, %30 : vector<32x128xf32>
    %37 = arith.addf %2, %36 : vector<32x128xf32>
    %cst_15 = arith.constant dense<0.000000e+00> : vector<32x128xf32>
    %38 = tpu.matmul %37, %3, %cst_15 {dimension_numbers = #tpu.dot_dimension_numbers<[1], [0], [0], [1], [0, 0, 1, 1], [], []>} : vector<32x128xf32>, vector<128x128xf32>, vector<32x128xf32> -> vector<32x128xf32>
    %cst_16 = arith.constant 1.000000e+00 : f32
    %39 = arith.addf %0, %cst_16 : f32
    %40 = vector.broadcast %39 : f32 to vector<32x128xf32>
    %41 = arith.addf %38, %40 : vector<32x128xf32>
    %42 = math.tanh %41 : vector<32x128xf32>
    %cst_17 = arith.constant 0.166666672 : f32
    %43 = vector.broadcast %cst_17 : f32 to vector<32x128xf32>
    %44 = arith.mulf %43, %42 : vector<32x128xf32>
    %45 = arith.addf %33, %44 : vector<32x128xf32>
    %c0_18 = arith.constant 0 : index
    %c0_19 = arith.constant 0 : index
    %46 = vector.load %arg5[%c0_18, %c0_19] : memref<32x128xf32, #tpu.memory_space<vmem>>, vector<32x128xf32>
    tpu.vector_store %arg5[%c0_18, %c0_19], %45 {strides = array<i32>} : memref<32x128xf32, #tpu.memory_space<vmem>>, vector<32x128xf32>,
    return
  }
  func.func @transform_0(%arg0: i32) -> i32 {
    %c0_i32 = arith.constant 0 : i32
    %c0_i32_0 = arith.constant 0 : i32
    return %c0_i32 : i32
  }
  func.func @transform_1(%arg0: i32) -> i32 {
    %c0_i32 = arith.constant 0 : i32
    %c0_i32_0 = arith.constant 0 : i32
    return %c0_i32 : i32
  }
  func.func @transform_2(%arg0: i32) -> (i32, i32) {
    %c0_i32 = arith.constant 0 : i32
    %c0_i32_0 = arith.constant 0 : i32
    return %arg0, %c0_i32 : i32, i32
  }
  func.func @transform_3(%arg0: i32) -> (i32, i32) {
    %c0_i32 = arith.constant 0 : i32
    %c0_i32_0 = arith.constant 0 : i32
    %c0_i32_1 = arith.constant 0 : i32
    return %c0_i32, %c0_i32_0 : i32, i32
  }
  func.func @transform_4(%arg0: i32) -> (i32, i32) {
    %c0_i32 = arith.constant 0 : i32
    %c0_i32_0 = arith.constant 0 : i32
    return %arg0, %c0_i32 : i32, i32
  }
}

</mosaic_0001>

<bundles_post_ra>
// kernel: tpu_custom_call.1
= control target key start
LH: loop header
LB: loop body
LE: loop exit
PB: predicated region body
PF: predicated region fallthrough
CT: control target
= control target key end

     0   :  { %s1744_s0 = inlined_call_operand.<no memory space> [shape: f32[1], index: 0, kind: input, shape index: {}]   ;;  %s1745_s1 = inlined_call_operand.<no memory space> [shape: f32[1], index: 1, kind: input, shape index: {}]   ;;  %s1746_s2 = inlined_call_operand.hbm [shape: f32[256,128], index: 2, kind: input, shape index: {}]   ;;  %s1747_s3 = inlined_call_operand.hbm [shape: f32[128,128], index: 3, kind: input, shape index: {}]   ;;  %s1748_s4 = inlined_call_operand.hbm [shape: f32[256,128], index: 4, kind: output, shape index: {}]  }
   0x1   :  { %9 = sst [smem:[#allocation2]] %s1744_s0 }
   0x2   :  { %10 = sst [smem:[#allocation3]] %s1745_s1 }
   0x3   :  { %11 = vsyncpa [#allocation5], 0 }
   0x4   :  { %13 = vsyncpa [#allocation5 + $0x1], 0 }
   0x5   :  { %14 = vsyncpa [#allocation8], 0 }
   0x6   :  { %15 = vsyncpa [#allocation6], 0 }
   0x7   :  { %17 = vsyncpa [#allocation6 + $0x1], 0  ;;  %s1413_s19 = smov 0   ;;  %s1415_s20 = smov 0  }
   0x8   :  { %s1417_s21 = smov 0   ;;  %s1419_s22 = smov 0  }
   0x9 LB: > { %s1434_s0 = sadd.s32 4294967295, %s1373_s22   ;;  %s774_s1 = sadd.s32 4294967294, %s1373_s22   ;;  %s1373_s22 = sphi %s1419_s22, %s1767_s22   ;;  %s1369_s21 = sphi %s1417_s21, %s1766_s21   ;;  %s1365_s20 = sphi %s1415_s20, %s1765_s20   ;;  %s1361_s19 = sphi %s1413_s19, %s1764_s19  }
   0xa   : > { %p85_p0 = scmp.ne.s32.totalorder %s1365_s20, %s1361_s19  ;;  %p1749_p1 = scmp.eq.s32.totalorder %s1434_s0, 0 }
   0xb   : > { %p136_p3 = scmp.eq.s32.totalorder %s774_s1, 7  ;;  %p775_p5 = scmp.ge.s32.totalorder %s1373_s22, 1 }
   0xc   : > { %p1443_p4 = por %p1749_p1, %p85_p0  ;;  %p143_p7 = scmp.lt.s32.totalorder %s1373_s22, 9 }
   0xd   : > { %p1448_p6 = por %p136_p3, %p85_p0  ;;  %s1375_s26 = smov [#allocation7]  }
   0xe   : > { %s1752_s23 = scalar_select %p1443_p4, 1, 0 }
   0xf   : > { %s1753_s24 = scalar_select %p1448_p6, 1, 0 }
  0x10   : > { %p1453_p8 = pnand %p775_p5, %p143_p7  ;;  %s161_s27 = sshll.u32 %s1375_s26, 4  ;;  %s162_s27 = int_to_ptr.vmem [resolvable:$true] %s161_s27 }
  0x11   : > { %s1466_s29 = sadd.s32 1, %s1373_s22   ;;  %s72_s30 = sadd.s32 1, %s1369_s21 }
  0x12   : > { %s1754_s25 = scalar_select %p1453_p8, 1, 0 }
  0x13   : > { %p1160_p9 = pneg %p1453_p8  ;;  %s69_s5 = ssub.s32 %s1373_s22, %s1466_s29 }
  0x14   : > { %s1245_s8 = scalar_lea.hbm %s1747_s3, 2048 }
  0x15   : > { %p1461_p10 = pnand %p1160_p9, %p1749_p1  ;;  %p1246_p11 = scmp.ne.s32.totalorder %s1747_s3, %s1245_s8 }
  0x16   : > { %p1252_p3 = scmp.lt.u32.totalorder %s1245_s8, %s1747_s3 }
  0x17   : > { %p1247_p12 = pneg %p1461_p10 }
  0x19   : > { %p1248_p13 = pnand %p1247_p12, %p1246_p11 }
  0x1b   : > { %p1249_p0 = pneg %p1248_p13 }
  0x1d   : > { %p1254_p5 = pnand %p1252_p3, %p1249_p0 }
  0x1f   : > { %1257 = shalt.err (!%p1254_p5)
}
  0x20   : > { %s1258_s13 = scalar_lea.vmem %s162_s27, 2048  ;;  %p1266_p2 = scmp.lt.s32.totalorder %s162_s27, %s162_s27 }
  0x21   : > { %p1259_p7 = scmp.ne.s32.totalorder %s162_s27, %s1258_s13  ;;  %p1267_p6 = scmp.lt.s32.totalorder %s1258_s13, %s1258_s13 }
  0x23   : > { %p1261_p9 = pnand %p1259_p7, %p1247_p12  ;;  %p1268_p4 = por %p1267_p6, %p1266_p2 }
  0x25   : > { %p1262_p1 = pneg %p1261_p9 }
  0x27   : > { %p1269_p8 = pnand %p1268_p4, %p1262_p1 }
  0x29   : > { %1272 = shalt.err (!%p1269_p8)
}
  0x2a   : > { %s1376_s14 = smov 128   ;;  %s1377_s15 = smov 8  }
  0x2b   : > { %1163 = dma.hbm_to_vmem [thread:$0]  (!%p1461_p10), %s1747_s3, 2048, %s162_s27, [#allocation8], %s1376_s14, %s1376_s14, %s1377_s15  }
  0x2c   : > { %p70_p1 = scmp.eq.s32.totalorder %s69_s5, 0  ;;  %p79_p2 = scmp.ne.s32.totalorder %s1369_s21, %s1365_s20 }
  0x2d   : > { %p80_p4 = scmp.eq.s32.totalorder %s1373_s22, 0  ;;  %p1173_p6 = scmp.lt.s32.totalorder %s1373_s22, 8 }
  0x2e   : > { %s1495_s18 = scalar_select %p70_p1, %s1369_s21, %s72_s30  }
  0x2f   : > { %p81_p8 = por %p80_p4, %p79_p2  ;;  %p1756_p11 = scmp.eq.s32.totalorder %s1434_s0, 7 }
  0x30   : > { %s175_s26 = sand.u32 1, %s1369_s21   ;;  %s790_s28 = sshll.u32 %s1373_s22, 9 }
  0x31   : > { %p1499_p12 = por %p1756_p11, %p79_p2  ;;  %s778_s6 = sshll.u32 %s175_s26, 5 }
  0x32   : > { %s1508_s9 = scalar_lea.hbm %s1746_s2, %s790_s28  ;;  %s179_s27 = scalar_lea.vmem [#allocation4], %s778_s6 }
  0x33   : > { %s186_s30 = sshll.u32 %s179_s27, 4  ;;  %p1510_p10 = pnand %p1173_p6, %p81_p8  ;;  %s1514_s30 = int_to_ptr.vmem [resolvable:$true] %s186_s30 }
  0x34   : > { %s1516_s10 = scalar_lea.sflag [#allocation5], %s175_s26  ;;  %s1273_s11 = scalar_lea.hbm %s1508_s9, 512 }
  0x35   : > { %p1274_p13 = scmp.ne.s32.totalorder %s1508_s9, %s1273_s11  ;;  %p1275_p0 = pneg %p1510_p10 }
  0x36   : > { %s1278_s16 = scalar_lea.hbm %s1746_s2, 4096  ;;  %p1279_p7 = scmp.lt.u32.totalorder %s1508_s9, %s1746_s2 }
  0x37   : > { %p1276_p3 = pnand %p1275_p0, %p1274_p13  ;;  %p1280_p9 = scmp.lt.u32.totalorder %s1278_s16, %s1273_s11 }
  0x38   : > { %p1282_p2 = scmp.lt.u32.totalorder %s1273_s11, %s1508_s9 }
  0x39   : > { %p1277_p5 = pneg %p1276_p3  ;;  %p1281_p1 = por %p1280_p9, %p1279_p7 }
  0x3b   : > { %p1283_p4 = por %p1282_p2, %p1281_p1 }
  0x3d   : > { %p1284_p6 = pnand %p1283_p4, %p1277_p5 }
  0x3f   : > { %1287 = shalt.err (!%p1284_p6)
}
  0x40   : > { %s1288_s26 = scalar_lea.vmem %s1514_s30, 512  ;;  %s1378_s6 = smov [#allocation4]  }
  0x41   : > { %p1289_p8 = scmp.ne.s32.totalorder %s1514_s30, %s1288_s26  ;;  %s1293_s7 = sshll.u32 %s1378_s6, 4  ;;  %s1294_s7 = int_to_ptr.vmem [resolvable:$false] %s1293_s7 }
  0x42   : > { %s1295_s8 = scalar_lea.vmem %s1294_s7, 1024  ;;  %p1296_p3 = scmp.lt.s32.totalorder %s1514_s30, %s1294_s7 }
  0x43   : > { %p1291_p11 = pnand %p1289_p8, %p1275_p0  ;;  %p1297_p7 = scmp.lt.s32.totalorder %s1295_s8, %s1288_s26 }
  0x45   : > { %p1292_p13 = pneg %p1291_p11  ;;  %p1298_p9 = por %p1297_p7, %p1296_p3 }
  0x47   : > { %p1299_p1 = pnand %p1298_p9, %p1292_p13 }
  0x49   : > { %1302 = shalt.err (!%p1299_p1)
}
  0x4a   : > { %1167 = dma.hbm_to_vmem [thread:$0]  (!%p1510_p10), %s1508_s9, 512, %s1514_s30, %s1516_s10, %s1376_s14, %s1376_s14, %s1377_s15  }
  0x4b   : > { %p1759_p0 = scmp.ne.s32.totalorder %s1754_s25, 0 }
  0x4c   : > { %s1550_s27 = sand.u32 (!%p1759_p0), 1, %s1365_s20   ;;  %p1760_p5 = scmp.ne.s32.totalorder (!%p1759_p0), %s1752_s23, 0 }
  0x4d   : > { %198 = sbr.rel (%p1759_p0) target bundleno = 1065 (0x429), region = 36  ;;  %s782_s11 = sshll.u32 (!%p1759_p0), %s1550_s27, 5 }
  0x4e   : > { %s201_s12 = scalar_lea.sflag (!%p1759_p0), [#allocation5], %s1550_s27  ;;  %s1556_s5 = scalar_lea.vmem (!%p1759_p0), [#allocation4], %s782_s11 }
  0x54   : > { %1348 = dma.done.wait (%p1760_p5), %s201_s12, 512  }
  0x55   : > { %1350 = vsyncadd (%p1760_p5), %s201_s12, 4294966784  ;;  %p1761_p10 = scmp.eq.s32.totalorder %s1434_s0, 0 }
  0x57   : > { %1352 = dma.done.wait (%p1761_p10), [#allocation8], 2048   ;;  %p1762_p2 = pmov %p1761_p10 }
  0x58   : > { %v241_v0 = vld [vmem:[#allocation7] sm:$0xff]  ;;  %v242_v1 = vld [vmem:[#allocation7 + $0x8] sm:$0xff]  ;;  %v243_v2 = vld [vmem:[#allocation7 + $0x10] sm:$0xff]  ;;  %s1647_s23 = sld [smem:[#allocation2]]  ;;  %s232_s30 = scalar_lea.vmem [#allocation9], %s782_s11 }
  0x59   : > { %1354 = vsyncadd (%p1762_p2), [#allocation8], 4294965248  ;;  %v1566_v3 = vpack.c.bf16 %v242_v1, %v241_v0  ;;  %v244_v4 = vld [vmem:[#allocation7 + $0x18] sm:$0xff]  ;;  %v245_v6 = vld [vmem:[#allocation7 + $0x20] sm:$0xff]  ;;  %s1650_s25 = sld [smem:[#allocation3]]  ;;  %s691_s10 = sshll.u32 %s232_s30, 4  ;;  %s1696_s10 = int_to_ptr.vmem [resolvable:$true] %s691_s10 }
  0x5a   : > { %v1568_v5 = vpack.c.bf16 %v244_v4, %v243_v2  ;;  %v246_v7 = vld [vmem:[#allocation7 + $0x28] sm:$0xff]  ;;  %v1578_v9 = vld [vmem:[%s1556_s5] sm:$0xff]  ;;  %v247_v10 = vld [vmem:[#allocation7 + $0x30] sm:$0xff]  ;;  %s791_s13 = sshll.u32 %s1434_s0, 9  ;;  %s678_s0 = scalar_lea.sflag [#allocation6], %s1550_s27 }
  0x5b   : > { %1025 = vmatprep.subr.bf16.mxu0 %v1566_v3  ;;  %1057 = vmatprep.subr.bf16.mxu1 %v1566_v3  ;;  %v1575_v8 = vpack.c.bf16 %v246_v7, %v245_v6  ;;  %v248_v11 = vld [vmem:[#allocation7 + $0x38] sm:$0xff]  ;;  %v249_v13 = vld [vmem:[#allocation7 + $0x40] sm:$0xff]  ;;  %v250_v14 = vld [vmem:[#allocation7 + $0x48] sm:$0xff]  ;;  %s1701_s28 = scalar_lea.hbm %s1748_s4, %s791_s13  ;;  %s1303_s26 = scalar_lea.vmem %s1696_s10, 512 }
  0x5c   : > { %1027 = vmatpush3.bf16.msra.mxu0 %v1566_v3  ;;  %1059 = vmatpush3.bf16.msra.mxu1 %v1566_v3  ;;  %v1585_v12 = vpack.c.bf16 %v248_v11, %v247_v10  ;;  %v1591_v15 = vpack.c.bf16 %v250_v14, %v249_v13  ;;  %v251_v16 = vld [vmem:[#allocation7 + $0x50] sm:$0xff]  ;;  %v252_v17 = vld [vmem:[#allocation7 + $0x58] sm:$0xff]  ;;  %v253_v19 = vld [vmem:[#allocation7 + $0x60] sm:$0xff]  ;;  %p1304_p4 = scmp.ne.s32.totalorder %s1696_s10, %s1303_s26  ;;  %s1379_s6 = smov [#allocation9]  }
  0x5d   : > { %1029 = vmatprep.subr.bf16.mxu0 %v1568_v5  ;;  %1061 = vmatprep.subr.bf16.mxu1 %v1568_v5  ;;  %v1597_v18 = vpack.c.bf16 %v252_v17, %v251_v16  ;;  %v254_v20 = vld [vmem:[#allocation7 + $0x68] sm:$0xff]  ;;  %v255_v22 = vld [vmem:[#allocation7 + $0x70] sm:$0xff]  ;;  %v256_v23 = vld [vmem:[#allocation7 + $0x78] sm:$0xff]  ;;  %s1307_s7 = sshll.u32 %s1379_s6, 4  ;;  %s1308_s7 = int_to_ptr.vmem [resolvable:$false] %s1307_s7 }
  0x5e   : > { %904 = vmatprep.mubr.f32.mxu0 %v1578_v9  ;;  %v1603_v21 = vpack.c.bf16 %v254_v20, %v253_v19  ;;  %v1609_v24 = vpack.c.bf16 %v256_v23, %v255_v22  ;;  %v1618_v25 = vld [vmem:[%s1556_s5 + $0x8] sm:$0xff]  ;;  %v1622_v26 = vld [vmem:[%s1556_s5 + $0x10] sm:$0xff]  ;;  %v1629_v27 = vld [vmem:[%s1556_s5 + $0x18] sm:$0xff]  ;;  %v257_v28 = vstv %s1647_s23  ;;  %s361_s15 = sadd.f32 0.5, %s1647_s23  ;;  %p1305_p6 = pnand %p1304_p4, %p1499_p12 }
  0x5f   : > { %s351_s14 = smul.f32 0.5, %s1650_s25  ;;  %s574_s9 = sadd.f32 1.0, %s1647_s23 }
  0x60   : > { %1031 = vmatpush3.bf16.msra.mxu0 %v1568_v5  ;;  %1063 = vmatpush3.bf16.msra.mxu1 %v1568_v5  ;;  %v362_v50 = vstv %s361_s15  ;;  %p1306_p8 = pneg %p1305_p6  ;;  %s1309_s8 = scalar_lea.vmem %s1308_s7, 1024 }
  0x61   : > { %1033 = vmatprep.subr.bf16.mxu0 %v1575_v8  ;;  %1065 = vmatprep.subr.bf16.mxu1 %v1575_v8  ;;  %v1653_v37 = vstv %s351_s14  ;;  %p1310_p11 = scmp.lt.s32.totalorder %s1696_s10, %s1308_s7  ;;  %p1311_p13 = scmp.lt.s32.totalorder %s1309_s8, %s1303_s26 }
  0x63   : > { %p1312_p3 = por %p1311_p13, %p1310_p11 }
  0x64   : > { %1035 = vmatpush3.bf16.msra.mxu0 %v1575_v8  ;;  %1067 = vmatpush3.bf16.msra.mxu1 %v1575_v8 }
  0x65   : > { %1037 = vmatprep.subr.bf16.mxu0 %v1585_v12  ;;  %1069 = vmatprep.subr.bf16.mxu1 %v1585_v12  ;;  %p1313_p7 = pnand %p1312_p3, %p1306_p8 }
  0x68   : > { %1039 = vmatpush3.bf16.msra.mxu0 %v1585_v12  ;;  %1071 = vmatpush3.bf16.msra.mxu1 %v1585_v12 }
  0x69   : > { %1041 = vmatprep.subr.bf16.mxu0 %v1591_v15  ;;  %1073 = vmatprep.subr.bf16.mxu1 %v1591_v15 }
  0x6c   : > { %1043 = vmatpush3.bf16.msra.mxu0 %v1591_v15  ;;  %1075 = vmatpush3.bf16.msra.mxu1 %v1591_v15 }
  0x6d   : > { %1045 = vmatprep.subr.bf16.mxu0 %v1597_v18  ;;  %1077 = vmatprep.subr.bf16.mxu1 %v1597_v18 }
  0x70   : > { %1047 = vmatpush3.bf16.msra.mxu0 %v1597_v18  ;;  %1079 = vmatpush3.bf16.msra.mxu1 %v1597_v18 }
  0x71   : > { %1049 = vmatprep.subr.bf16.mxu0 %v1603_v21  ;;  %1081 = vmatprep.subr.bf16.mxu1 %v1603_v21 }
  0x74   : > { %1051 = vmatpush3.bf16.msra.mxu0 %v1603_v21  ;;  %1083 = vmatpush3.bf16.msra.mxu1 %v1603_v21 }
  0x75   : > { %1053 = vmatprep.subr.bf16.mxu0 %v1609_v24  ;;  %1085 = vmatprep.subr.bf16.mxu1 %v1609_v24 }
  0x78   : > { %1055 = vmatpush3.bf16.msra.mxu0 %v1609_v24  ;;  %1087 = vmatpush3.bf16.msra.mxu1 %v1609_v24 }
  0x79   : > { %1089 = vmatprep.subr.bf16.mxu0 %v1566_v3  ;;  %1121 = vmatprep.subr.bf16.mxu1 %v1566_v3 }
  0x7b   : > { %905 = vmatmul.mubr.f32.vlgmr.msra.gmra.mrb[0].mxu0 %v1618_v25 }
  0x7c   : > { %907 = vmatprep.mubr.f32.mxu0 %v1622_v26  ;;  %1091 = vmatpush3.bf16.msra.mxu0 %v1566_v3 }
  0x7d   : > { %1093 = vmatprep.subr.bf16.mxu0 %v1568_v5 }
  0x7f   : > { %908 = vmatmul.mubr.f32.gmra.mrb[2].mxu0 %v1629_v27 }
  0x80   : > { %1095 = vmatpush3.bf16.msra.mxu0 %v1568_v5 }
  0x81   : > { %1097 = vmatprep.subr.bf16.mxu0 %v1575_v8 }
  0x84   : > { %1099 = vmatpush3.bf16.msra.mxu0 %v1575_v8 }
  0x85   : > { %1101 = vmatprep.subr.bf16.mxu0 %v1585_v12 }
  0x88   : > { %1103 = vmatpush3.bf16.msra.mxu0 %v1585_v12 }
  0x89   : > { %1105 = vmatprep.subr.bf16.mxu0 %v1591_v15 }
  0x8c   : > { %1107 = vmatpush3.bf16.msra.mxu0 %v1591_v15 }
  0x8d   : > { %1109 = vmatprep.subr.bf16.mxu0 %v1597_v18 }
  0x90   : > { %1111 = vmatpush3.bf16.msra.mxu0 %v1597_v18 }
  0x91   : > { %1113 = vmatprep.subr.bf16.mxu0 %v1603_v21 }
  0x94   : > { %1115 = vmatpush3.bf16.msra.mxu0 %v1603_v21 }
  0x95   : > { %1117 = vmatprep.subr.bf16.mxu0 %v1609_v24 }
  0x98   : > { %1119 = vmatpush3.bf16.msra.mxu0 %v1609_v24 }
 0x14e   : > { %v906_v29 = vpop.f32.mrb[0].mxu0 }
 0x14f   : > { %v330_v30 = vadd.f32 %v906_v29, %v257_v28  ;;  %v324_v31 = vpop.f32.mrb[1].mxu0 }
 0x150   : > { %v325_v32 = vadd.f32 %v324_v31, %v257_v28  ;;  %v565_v31 = vstv %s1650_s25 }
 0x151   : > { %1213 = vtanh.f32 %v330_v30 }
 0x152   : > { %1215 = vtanh.f32 %v325_v32  ;;  %v909_v33 = vpop.f32.mrb[2].mxu0 }
 0x153   : > { %v340_v34 = vadd.f32 %v909_v33, %v257_v28  ;;  %v334_v35 = vpop.f32.mrb[3].mxu0 }
 0x154   : > { %v335_v36 = vadd.f32 %v334_v35, %v257_v28 }
 0x155   : > { %1217 = vtanh.f32 %v340_v34 }
 0x156   : > { %1219 = vtanh.f32 %v335_v36 }
 0x15b   : > { %v1214_v38 = vpop.eup %1213 }
 0x15c   : > { %v1216_v39 = vpop.eup %1215  ;;  %v354_v40 = vmul.f32 %v1214_v38, %v1653_v37  ;;  %v348_v62 = vmul.f32 0.16666667, %v1214_v38 }
 0x15d   : > { %v353_v41 = vmul.f32 %v1216_v39, %v1653_v37  ;;  %v347_v1 = vmul.f32 0.16666667, %v1216_v39 }
 0x15e   : > { %v358_v45 = vadd.f32 %v354_v40, %v1618_v25 }
 0x15f   : > { %v1218_v42 = vpop.eup %1217  ;;  %v357_v43 = vadd.f32 %v353_v41, %v1578_v9 }
 0x160   : > { %v1220_v44 = vpop.eup %1219  ;;  %v356_v46 = vmul.f32 %v1218_v42, %v1653_v37  ;;  %v350_v11 = vmul.f32 0.16666667, %v1218_v42 }
 0x161   : > { %942 = vmatprep.mubr.f32.mxu1 %v357_v43  ;;  %v355_v47 = vmul.f32 %v1220_v44, %v1653_v37  ;;  %v349_v14 = vmul.f32 0.16666667, %v1220_v44 }
 0x162   : > { %943 = vmatmul.mubr.f32.vlgmr.msra.gmra.mrb[0].mxu1 %v358_v45  ;;  %v360_v49 = vadd.f32 %v356_v46, %v1629_v27 }
 0x163   : > { %v359_v48 = vadd.f32 %v355_v47, %v1622_v26  ;;  %1123 = vmatpush3.bf16.msra.mxu1 %v1566_v3 }
 0x164   : > { %1125 = vmatprep.subr.bf16.mxu1 %v1568_v5 }
 0x165   : > { %945 = vmatprep.mubr.f32.mxu1 %v359_v48 }
 0x166   : > { %946 = vmatmul.mubr.f32.gmra.mrb[2].mxu1 %v360_v49 }
 0x167   : > { %1127 = vmatpush3.bf16.msra.mxu1 %v1568_v5 }
 0x168   : > { %1129 = vmatprep.subr.bf16.mxu1 %v1575_v8 }
 0x16b   : > { %1131 = vmatpush3.bf16.msra.mxu1 %v1575_v8 }
 0x16c   : > { %1133 = vmatprep.subr.bf16.mxu1 %v1585_v12 }
 0x16f   : > { %1135 = vmatpush3.bf16.msra.mxu1 %v1585_v12 }
 0x170   : > { %1137 = vmatprep.subr.bf16.mxu1 %v1591_v15 }
 0x173   : > { %1139 = vmatpush3.bf16.msra.mxu1 %v1591_v15 }
 0x174   : > { %1141 = vmatprep.subr.bf16.mxu1 %v1597_v18 }
 0x177   : > { %1143 = vmatpush3.bf16.msra.mxu1 %v1597_v18 }
 0x178   : > { %1145 = vmatprep.subr.bf16.mxu1 %v1603_v21 }
 0x17b   : > { %1147 = vmatpush3.bf16.msra.mxu1 %v1603_v21 }
 0x17c   : > { %1149 = vmatprep.subr.bf16.mxu1 %v1609_v24 }
 0x17f   : > { %1151 = vmatpush3.bf16.msra.mxu1 %v1609_v24 }
 0x235   : > { %v944_v51 = vpop.f32.mrb[0].mxu1 }
 0x236   : > { %v435_v52 = vadd.f32 %v944_v51, %v362_v50  ;;  %v429_v53 = vpop.f32.mrb[1].mxu1 }
 0x237   : > { %v430_v54 = vadd.f32 %v429_v53, %v362_v50 }
 0x238   : > { %1221 = vtanh.f32 %v435_v52 }
 0x239   : > { %1223 = vtanh.f32 %v430_v54  ;;  %v947_v55 = vpop.f32.mrb[2].mxu1 }
 0x23a   : > { %v445_v56 = vadd.f32 %v947_v55, %v362_v50  ;;  %v439_v57 = vpop.f32.mrb[3].mxu1 }
 0x23b   : > { %v440_v58 = vadd.f32 %v439_v57, %v362_v50 }
 0x23c   : > { %1225 = vtanh.f32 %v445_v56 }
 0x23d   : > { %1227 = vtanh.f32 %v440_v58 }
 0x242   : > { %v1222_v59 = vpop.eup %1221 }
 0x243   : > { %v1224_v60 = vpop.eup %1223  ;;  %v461_v61 = vmul.f32 %v1222_v59, %v1653_v37  ;;  %v453_v63 = vmul.f32 0.33333334, %v1222_v59 }
 0x244   : > { %v460_v0 = vmul.f32 %v1224_v60, %v1653_v37  ;;  %v452_v2 = vmul.f32 0.33333334, %v1224_v60 }
 0x245   : > { %v457_v3 = vadd.f32 %v453_v63, %v348_v62  ;;  %v465_v8 = vadd.f32 %v461_v61, %v1618_v25 }
 0x246   : > { %v1226_v4 = vpop.eup %1225  ;;  %v464_v5 = vadd.f32 %v460_v0, %v1578_v9  ;;  %v456_v6 = vadd.f32 %v452_v2, %v347_v1 }
 0x247   : > { %v1228_v7 = vpop.eup %1227  ;;  %v463_v10 = vmul.f32 %v1226_v4, %v1653_v37  ;;  %v455_v12 = vmul.f32 0.33333334, %v1226_v4 }
 0x248   : > { %980 = vmatprep.mubr.f32.mxu0 %v464_v5  ;;  %v462_v13 = vmul.f32 %v1228_v7, %v1653_v37  ;;  %v454_v15 = vmul.f32 0.33333334, %v1228_v7 }
 0x249   : > { %981 = vmatmul.mubr.f32.vlgmr.msra.gmra.mrb[4].mxu0 %v465_v8  ;;  %v459_v16 = vadd.f32 %v455_v12, %v350_v11  ;;  %v467_v19 = vadd.f32 %v463_v10, %v1629_v27 }
 0x24a   : > { %v466_v17 = vadd.f32 %v462_v13, %v1622_v26  ;;  %v458_v18 = vadd.f32 %v454_v15, %v349_v14 }
 0x24c   : > { %983 = vmatprep.mubr.f32.mxu0 %v466_v17 }
 0x24d   : > { %984 = vmatmul.mubr.f32.gmra.mrb[6].mxu0 %v467_v19 }
 0x31c   : > { %v982_v20 = vpop.f32.mrb[4].mxu0 }
 0x31d   : > { %v540_v21 = vadd.f32 %v982_v20, %v362_v50  ;;  %v534_v22 = vpop.f32.mrb[5].mxu0 }
 0x31e   : > { %v535_v23 = vadd.f32 %v534_v22, %v362_v50 }
 0x31f   : > { %1229 = vtanh.f32 %v540_v21 }
 0x320   : > { %1231 = vtanh.f32 %v535_v23  ;;  %v985_v24 = vpop.f32.mrb[6].mxu0 }
 0x321   : > { %v550_v28 = vadd.f32 %v985_v24, %v362_v50  ;;  %v544_v29 = vpop.f32.mrb[7].mxu0 }
 0x322   : > { %v545_v30 = vadd.f32 %v544_v29, %v362_v50 }
 0x323   : > { %1233 = vtanh.f32 %v550_v28 }
 0x324   : > { %1235 = vtanh.f32 %v545_v30 }
 0x329   : > { %v1230_v32 = vpop.eup %1229 }
 0x32a   : > { %v1232_v33 = vpop.eup %1231  ;;  %v567_v34 = vmul.f32 %v1230_v32, %v565_v31  ;;  %v558_v35 = vmul.f32 0.33333334, %v1230_v32 }
 0x32b   : > { %v566_v36 = vmul.f32 %v1232_v33, %v565_v31  ;;  %v557_v37 = vmul.f32 0.33333334, %v1232_v33 }
 0x32c   : > { %v562_v38 = vadd.f32 %v558_v35, %v457_v3  ;;  %v571_v43 = vadd.f32 %v567_v34, %v1618_v25 }
 0x32d   : > { %v1234_v39 = vpop.eup %1233  ;;  %v570_v40 = vadd.f32 %v566_v36, %v1578_v9  ;;  %v561_v41 = vadd.f32 %v557_v37, %v456_v6  ;;  %v575_v9 = vstv %s574_s9 }
 0x32e   : > { %v1236_v42 = vpop.eup %1235  ;;  %v569_v44 = vmul.f32 %v1234_v39, %v565_v31  ;;  %v560_v45 = vmul.f32 0.33333334, %v1234_v39 }
 0x32f   : > { %1018 = vmatprep.mubr.f32.mxu1 %v570_v40  ;;  %v568_v46 = vmul.f32 %v1236_v42, %v565_v31  ;;  %v559_v47 = vmul.f32 0.33333334, %v1236_v42 }
 0x330   : > { %1019 = vmatmul.mubr.f32.vlgmr.msra.gmra.mrb[4].mxu1 %v571_v43  ;;  %v564_v48 = vadd.f32 %v560_v45, %v459_v16  ;;  %v573_v51 = vadd.f32 %v569_v44, %v1629_v27 }
 0x331   : > { %v572_v49 = vadd.f32 %v568_v46, %v1622_v26  ;;  %v563_v50 = vadd.f32 %v559_v47, %v458_v18 }
 0x333   : > { %1021 = vmatprep.mubr.f32.mxu1 %v572_v49 }
 0x334   : > { %1022 = vmatmul.mubr.f32.gmra.mrb[6].mxu1 %v573_v51 }
 0x403   : > { %v1020_v52 = vpop.f32.mrb[4].mxu1 }
 0x404   : > { %v648_v53 = vadd.f32 %v1020_v52, %v575_v9  ;;  %v642_v25 = vpop.f32.mrb[5].mxu1 }
 0x405   : > { %v643_v54 = vadd.f32 %v642_v25, %v575_v9 }
 0x406   : > { %1237 = vtanh.f32 %v648_v53 }
 0x407   : > { %1239 = vtanh.f32 %v643_v54  ;;  %v1023_v55 = vpop.f32.mrb[6].mxu1 }
 0x408   : > { %v658_v56 = vadd.f32 %v1023_v55, %v575_v9  ;;  %v652_v57 = vpop.f32.mrb[7].mxu1 }
 0x409   : > { %v653_v58 = vadd.f32 %v652_v57, %v575_v9 }
 0x40a   : > { %1241 = vtanh.f32 %v658_v56 }
 0x40b   : > { %1243 = vtanh.f32 %v653_v58 }
 0x410   : > { %v1238_v26 = vpop.eup %1237 }
 0x411   : > { %v1240_v27 = vpop.eup %1239  ;;  %v666_v59 = vmul.f32 0.16666667, %v1238_v26 }
 0x412   : > { %v665_v60 = vmul.f32 0.16666667, %v1240_v27 }
 0x413   : > { %v670_v61 = vadd.f32 %v666_v59, %v562_v38 }
 0x414   : > { %v1242_v62 = vpop.eup %1241  ;;  %v669_v63 = vadd.f32 %v665_v60, %v561_v41 }
 0x415   : > { %v1244_v0 = vpop.eup %1243  ;;  %674 = vst [vmem:[%s232_s30 + $0x8] sm:$0xff] %v670_v61  ;;  %v668_v1 = vmul.f32 0.16666667, %v1242_v62 }
 0x416   : > { %673 = vst [vmem:[%s232_s30] sm:$0xff] %v669_v63  ;;  %v667_v2 = vmul.f32 0.16666667, %v1244_v0 }
 0x417   : > { %v672_v3 = vadd.f32 %v668_v1, %v564_v48 }
 0x418   : > { %v671_v4 = vadd.f32 %v667_v2, %v563_v50 }
 0x419   : > { %676 = vst [vmem:[%s232_s30 + $0x18] sm:$0xff] %v672_v3 }
 0x41a   : > { %675 = vst [vmem:[%s232_s30 + $0x10] sm:$0xff] %v671_v4 }
 0x41b   : > { %1316 = shalt.err (!%p1313_p7)
}
 0x41c   : > { %s1317_s11 = scalar_lea.hbm %s1701_s28, 512  ;;  %s1321_s23 = scalar_lea.hbm %s1748_s4, 4096 }
 0x41d   : > { %p1318_p9 = scmp.ne.s32.totalorder %s1701_s28, %s1317_s11  ;;  %p1322_p5 = scmp.lt.u32.totalorder %s1701_s28, %s1748_s4 }
 0x41e   : > { %p1323_p10 = scmp.lt.u32.totalorder %s1321_s23, %s1317_s11  ;;  %p1325_p4 = scmp.lt.u32.totalorder %s1317_s11, %s1701_s28 }
 0x41f   : > { %p1319_p1 = pnand %p1318_p9, %p1499_p12 }
 0x420   : > { %p1324_p2 = por %p1323_p10, %p1322_p5 }
 0x421   : > { %p1320_p0 = pneg %p1319_p1 }
 0x422   : > { %p1326_p6 = por %p1325_p4, %p1324_p2 }
 0x424   : > { %p1327_p8 = pnand %p1326_p6, %p1320_p0 }
 0x426   : > { %1330 = shalt.err (!%p1327_p8)
}
 0x427   : > { %s1380_s15 = smov 128   ;;  %s1381_s9 = smov 8  }
 0x428   : > { %1158 = dma.vmem_to_hbm [thread:$0]  (%p1499_p12), %s1696_s10, 512, %s1701_s28, %s678_s0, %s1380_s15, %s1380_s15, %s1381_s9  }
 0x429 PF: > { %p1175_p11 = scmp.ge.s32.totalorder %s1373_s22, 2  ;;  %s706_s30 = sand.u32 1, %s1361_s19  }
 0x42a   : > { %p1763_p13 = scmp.ne.s32.totalorder %s1753_s24, 0  ;;  %s707_s13 = scalar_lea.sflag [#allocation6], %s706_s30 }
 0x42c   : > { %p1169_p3 = pnand %p1175_p11, %p1763_p13 }
 0x42e   : > { %1356 = dma.done.wait (!%p1169_p3), %s707_s13, 512  }
 0x42f   : > { %1358 = vsyncadd (!%p1169_p3), %s707_s13, 4294966784  ;;  %p20_p7 = scmp.ge.s32.totalorder %s1466_s29, 10   ;;  %s1764_s19 = smov %s1365_s20 }
 0x430   : > { %s1765_s20 = smov %s1369_s21  ;;  %s1766_s21 = smov %s1495_s18 }
 0x431   : > { %s1767_s22 = smov %s1466_s29  ;;  %22 = sbr.rel (!%p20_p7) target bundleno = 9 (0x9), region = 85 }
 0x438   :  { %712 = vsyncpa [#allocation5], 1 }
 0x439   :  { %714 = vsyncpa [#allocation5 + $0x1], 1 }
 0x43a   :  { %715 = vsyncpa [#allocation8], 1 }
 0x43b   :  { %716 = vsyncpa [#allocation6], 1 }
 0x43c   :  { %718 = vsyncpa [#allocation6 + $0x1], 1 }

</bundles_post_ra>
